<compile_context>
chip_gen: v6e
topology: v6e:2x2x1
jax: 0.10.0
libtpu: 0.0.40
codegen_flags: <defaults>
</compile_context>

<pallas_src>
import functools

import jax
import jax.numpy as jnp
from jax import lax
from jax.experimental import pallas as pl
from jax.experimental.pallas import tpu as pltpu


_VMEM_LIMIT = 48 * 1024 * 1024   # headroom under v7x's 64 MiB physical VMEM


# ------------------------------ tiling helpers ------------------------------

def _pick_tile(dim, preferred, align):
    """Largest divisor of `dim` that is <= `preferred` and a multiple of
    `align` (8 for sublane dims, 128 for lane dims).  Falls back to the full
    dimension (always a legal block) only if no aligned divisor exists."""
    if dim <= preferred:
        return dim
    for t in range(preferred, align - 1, -1):
        if dim % t == 0 and t % align == 0:
            return t
    return dim


def _split_for_megacore(dim, tile, align):
    """If a leading 'parallel' grid axis would have extent 1, try to shrink the
    tile (keeping alignment/divisibility) so v7x's 2 TensorCores both get work."""
    if dim // tile >= 2:
        return tile
    for t in range(tile // 2, align - 1, -1):
        if dim % t == 0 and t % align == 0:
            return t
    return tile


# ---------------- fused QKV projection (one pass over x, 3 outputs) ---------

def _qkv_kernel(x_ref, wq_ref, wk_ref, wv_ref, bq_ref, bk_ref, bv_ref,
                q_ref, k_ref, v_ref, accq_ref, acck_ref, accv_ref):
    kk = pl.program_id(2)

    @pl.when(kk == 0)
    def _():
        accq_ref[...] = jnp.zeros_like(accq_ref)
        acck_ref[...] = jnp.zeros_like(acck_ref)
        accv_ref[...] = jnp.zeros_like(accv_ref)

    xb = x_ref[...].astype(jnp.bfloat16)          # bf16 MXU operands, f32 acc
    dn = (((1,), (1,)), ((), ()))                 # contract on last dims (trans-B)
    accq_ref[...] += lax.dot_general(xb, wq_ref[...], dn,
                                     preferred_element_type=jnp.float32)
    acck_ref[...] += lax.dot_general(xb, wk_ref[...], dn,
                                     preferred_element_type=jnp.float32)
    accv_ref[...] += lax.dot_general(xb, wv_ref[...], dn,
                                     preferred_element_type=jnp.float32)

    @pl.when(kk == pl.num_programs(2) - 1)
    def _():
        q_ref[...] = (accq_ref[...] + bq_ref[...]).astype(q_ref.dtype)
        k_ref[...] = (acck_ref[...] + bk_ref[...]).astype(k_ref.dtype)
        v_ref[...] = (accv_ref[...] + bv_ref[...]).astype(v_ref.dtype)


def qkv_projection(x2d, p):
    """x2d: (M, D) f32 -> Q, K, V each (M, D) bf16."""
    M, D = x2d.shape
    tm = _split_for_megacore(M, _pick_tile(M, 256, 8), 8)
    tn = _pick_tile(D, 256, 128)
    tk = _pick_tile(D, 512, 128)
    grid = (M // tm, D // tn, D // tk)

    x_spec = pl.BlockSpec((tm, tk), lambda i, j, kk: (i, kk))
    w_spec = pl.BlockSpec((tn, tk), lambda i, j, kk: (j, kk))
    b_spec = pl.BlockSpec((1, tn), lambda i, j, kk: (0, j))
    o_spec = pl.BlockSpec((tm, tn), lambda i, j, kk: (i, j))
    o_shape = jax.ShapeDtypeStruct((M, D), jnp.bfloat16)

    # TODO(synk): on v7x consider pipeline_mode=pl.Buffered(3) on the x/w specs
    # once bf16 shrinks per-tile compute enough to expose DMA latency.
    return pl.pallas_call(
        _qkv_kernel,
        out_shape=(o_shape, o_shape, o_shape),
        grid=grid,
        in_specs=[x_spec, w_spec, w_spec, w_spec, b_spec, b_spec, b_spec],
        out_specs=(o_spec, o_spec, o_spec),
        scratch_shapes=[pltpu.VMEM((tm, tn), jnp.float32)] * 3,
        compiler_params=pltpu.CompilerParams(
            dimension_semantics=("parallel", "parallel", "arbitrary"),
            vmem_limit_bytes=_VMEM_LIMIT),
    )(x2d, p["wq"], p["wk"], p["wv"], p["bq"], p["bk"], p["bv"])


# -------------- flash-style scaled dot-product attention (batched) ----------

def _flash_attn_kernel(q_ref, k_ref, v_ref, o_ref, m_ref, l_ref, acc_ref, *,
                       scale):
    kv = pl.program_id(2)

    @pl.when(kv == 0)
    def _():
        m_ref[...] = jnp.full(m_ref.shape, -jnp.inf, jnp.float32)
        l_ref[...] = jnp.zeros_like(l_ref)
        acc_ref[...] = jnp.zeros_like(acc_ref)

    # Fold 1/sqrt(dh) into Q (O(tq*Dh) f32 mults, off the S*S path); MXU
    # operands are bf16, scores accumulate in f32.
    q = (q_ref[...].astype(jnp.float32) * scale).astype(jnp.bfloat16)
    s = lax.dot_general(q, k_ref[...],
                        dimension_numbers=(((2,), (2,)), ((0,), (0,))),
                        preferred_element_type=jnp.float32)      # (gh, tq, tkv)

    m_prev = m_ref[...]
    m_new = jnp.maximum(m_prev, jnp.max(s, axis=-1, keepdims=True))
    alpha = jnp.exp(m_prev - m_new)
    p = jnp.exp(s - m_new)
    l_ref[...] = alpha * l_ref[...] + jnp.sum(p, axis=-1, keepdims=True)
    acc_ref[...] = alpha * acc_ref[...] + lax.dot_general(
        p.astype(jnp.bfloat16), v_ref[...],
        dimension_numbers=(((2,), (1,)), ((0,), (0,))),
        preferred_element_type=jnp.float32)
    m_ref[...] = m_new

    @pl.when(kv == pl.num_programs(2) - 1)
    def _():
        inv_l = pl.reciprocal(l_ref[...], approx=True)   # EUP slot, off VALU path
        o_ref[...] = (acc_ref[...] * inv_l).astype(o_ref.dtype)


def _attention_tiles(G, S, Dh):
    tq = _pick_tile(S, 256, 8)
    tkv = _pick_tile(S, 512, 8)
    # Size gh by a VMEM budget (double-buffered bf16 q/k/v/o blocks + f32 score
    # block + online-softmax scratch), not by 128 // Dh.
    budget = 16 * 1024 * 1024
    gh = 1
    for cand in range(1, G + 1):
        if G % cand:
            continue
        io_bytes = 2 * cand * (2 * tq * Dh + 2 * tkv * Dh) * 2
        scratch = cand * (tq * tkv * 4 + tq * Dh * 4 + 2 * tq * 4)
        if io_bytes + scratch <= budget:
            gh = cand
    # Keep >= 2 head-group blocks when possible (leading "parallel" axis feeds
    # v7x's two TensorCores).
    if G // gh < 2:
        for cand in range(gh - 1, 0, -1):
            if G % cand == 0 and G // cand >= 2:
                gh = cand
                break
    return gh, tq, tkv


def flash_attention(q, k, v, scale):
    """q, k, v: (G, S, Dh) bf16 -> (G, S, Dh) bf16."""
    G, S, Dh = q.shape
    gh, tq, tkv = _attention_tiles(G, S, Dh)

    q_spec = pl.BlockSpec((gh, tq, Dh), lambda g, qi, kv: (g, qi, 0))
    kv_spec = pl.BlockSpec((gh, tkv, Dh), lambda g, qi, kv: (g, kv, 0))
    # TODO(synk): for Dh < 128 the output store is lane-masked (vst.msk); a
    # production layout would present a >=128-lane last dim for the output slab.
    return pl.pallas_call(
        functools.partial(_flash_attn_kernel, scale=scale),
        out_shape=jax.ShapeDtypeStruct((G, S, Dh), jnp.bfloat16),
        grid=(G // gh, S // tq, S // tkv),
        in_specs=[q_spec, kv_spec, kv_spec],
        out_specs=q_spec,
        scratch_shapes=[
            pltpu.VMEM((gh, tq, 1), jnp.float32),    # running max m
            pltpu.VMEM((gh, tq, 1), jnp.float32),    # running denom l
            pltpu.VMEM((gh, tq, Dh), jnp.float32),   # running numerator acc
        ],
        compiler_params=pltpu.CompilerParams(
            dimension_semantics=("parallel", "parallel", "arbitrary"),
            vmem_limit_bytes=_VMEM_LIMIT),
    )(q, k, v)


# ------ output projection (tiled contraction) + residual + LayerNorm --------

def _out_ln_kernel(ctx_ref, w_ref, b_ref, x_ref, g_ref, beta_ref, o_ref,
                   acc_ref, *, eps):
    kk = pl.program_id(1)

    @pl.when(kk == 0)
    def _():
        acc_ref[...] = jnp.zeros_like(acc_ref)

    acc_ref[...] += lax.dot_general(
        ctx_ref[...], w_ref[...],
        dimension_numbers=(((1,), (1,)), ((), ())),   # trans-B, no vxpose
        preferred_element_type=jnp.float32)

    @pl.when(kk == pl.num_programs(1) - 1)
    def _():
        # out = LayerNorm(fc(context) + x)    (dropout p=0.0 -> identity)
        y = acc_ref[...] + b_ref[...] + x_ref[...]
        mu = jnp.mean(y, axis=-1, keepdims=True)
        var = jnp.mean((y - mu) ** 2, axis=-1, keepdims=True)
        yhat = (y - mu) * lax.rsqrt(var + eps)
        o_ref[...] = (yhat * g_ref[...] + beta_ref[...]).astype(o_ref.dtype)


def out_proj_residual_layernorm(ctx2d, x2d, p, eps=1e-5):
    """ctx2d: (M, D) bf16 context, x2d: (M, D) f32 residual -> (M, D) f32."""
    M, D = x2d.shape
    tm = _split_for_megacore(M, _pick_tile(M, 256, 8), 8)
    tkc = _pick_tile(D, 512, 128)
    grid = (M // tm, D // tkc)

    return pl.pallas_call(
        functools.partial(_out_ln_kernel, eps=eps),
        out_shape=jax.ShapeDtypeStruct((M, D), jnp.float32),
        grid=grid,
        in_specs=[
            pl.BlockSpec((tm, tkc), lambda i, kk: (i, kk)),   # context tile (bf16)
            pl.BlockSpec((D, tkc), lambda i, kk: (0, kk)),    # wo streamed over K (bf16)
            pl.BlockSpec((1, D), lambda i, kk: (0, 0)),       # bias
            pl.BlockSpec((tm, D), lambda i, kk: (i, 0)),      # residual x tile (f32)
            pl.BlockSpec((1, D), lambda i, kk: (0, 0)),       # gamma
            pl.BlockSpec((1, D), lambda i, kk: (0, 0)),       # beta
        ],
        out_specs=pl.BlockSpec((tm, D), lambda i, kk: (i, 0)),
        scratch_shapes=[pltpu.VMEM((tm, D), jnp.float32)],
        compiler_params=pltpu.CompilerParams(
            dimension_semantics=("parallel", "arbitrary"),
            vmem_limit_bytes=_VMEM_LIMIT),
    )(ctx2d, p["wo"], p["bo"], x2d, p["gamma"], p["beta"])


# ------------------------------ module wrapper ------------------------------

def prepare_params(params):
    """One-time weight preparation (NOT on the per-forward hot path): cast MXU
    weights to bf16 and reshape biases / LN params to (1, D) row vectors."""
    D = params["wq"].shape[0]
    return {
        "wq": params["wq"].astype(jnp.bfloat16),
        "wk": params["wk"].astype(jnp.bfloat16),
        "wv": params["wv"].astype(jnp.bfloat16),
        "wo": params["wo"].astype(jnp.bfloat16),
        "bq": params["bq"].reshape(1, D).astype(jnp.float32),
        "bk": params["bk"].reshape(1, D).astype(jnp.float32),
        "bv": params["bv"].reshape(1, D).astype(jnp.float32),
        "bo": params["bo"].reshape(1, D).astype(jnp.float32),
        "gamma": params["gamma"].reshape(1, D).astype(jnp.float32),
        "beta": params["beta"].reshape(1, D).astype(jnp.float32),
    }


def multi_head_attention(x, prepared, num_head):
    B, S, D = x.shape
    dim_head = D // num_head
    M = B * S
    x2d = x.reshape(M, D)

    # One pass over x, three (M, D) bf16 outputs -- no post-hoc column slices.
    Q2d, K2d, V2d = qkv_projection(x2d, prepared)

    # Exactly mirrors torch's Q.view(batch*num_head, -1, dim_head): a plain
    # row-major reshape (the original module does NOT transpose heads).
    G = B * num_head
    Q = Q2d.reshape(G, -1, dim_head)
    K = K2d.reshape(G, -1, dim_head)
    V = V2d.reshape(G, -1, dim_head)

    context = flash_attention(Q, K, V, scale=float(dim_head) ** (-0.5))
    context2d = context.reshape(M, D)

    # TODO(synk): nn.Dropout(0.0) is an identity; nonzero dropout would need
    # pltpu.prng_seed / prng_random_bits inside the kernel.
    out2d = out_proj_residual_layernorm(context2d, x2d, prepared)
    return out2d.reshape(B, S, D)


# --------------------------- pure-JAX reference -----------------------------

def _reference(x, params, num_head):
    B, S, D = x.shape
    dim_head = D // num_head
    q = x @ params["wq"].T + params["bq"]
    k = x @ params["wk"].T + params["bk"]
    v = x @ params["wv"].T + params["bv"]
    q = q.reshape(B * num_head, -1, dim_head)
    k = k.reshape(B * num_head, -1, dim_head)
    v = v.reshape(B * num_head, -1, dim_head)
    scale = float(dim_head) ** (-0.5)
    att = jax.nn.softmax(jnp.einsum("gqd,gkd->gqk", q, k) * scale, axis=-1)
    ctx = jnp.einsum("gqk,gkd->gqd", att, v).reshape(B, S, D)
    out = ctx @ params["wo"].T + params["bo"] + x
    mu = out.mean(-1, keepdims=True)
    var = ((out - mu) ** 2).mean(-1, keepdims=True)
    return (out - mu) / jnp.sqrt(var + 1e-5) * params["gamma"] + params["beta"]


# ---------------------------------- main ------------------------------------

if __name__ == "__main__":
    B, S, D, H = 2, 8, 32, 4  # batch, seq, dim_model, num_head

    key = jax.random.PRNGKey(0)
    ks = jax.random.split(key, 10)
    init = lambda k, shape: (jax.random.normal(k, shape, jnp.float32) * 0.05)

    params = {
        "wq": init(ks[0], (D, D)), "bq": init(ks[1], (D,)),
        "wk": init(ks[2], (D, D)), "bk": init(ks[3], (D,)),
        "wv": init(ks[4], (D, D)), "bv": init(ks[5], (D,)),
        "wo": init(ks[6], (D, D)), "bo": init(ks[7], (D,)),
        "gamma": jnp.ones((D,), jnp.float32),
        "beta": jnp.zeros((D,), jnp.float32),
    }

    x = jax.random.normal(ks[8], (B, S, D), jnp.float32)

    prepared = prepare_params(params)   # one-time, off the forward hot path

    out = multi_head_attention(x, prepared, H)
    out = jax.block_until_ready(out)

    ref = _reference(x, params, H)
    assert out.shape == (B, S, D)
    # Tolerance reflects bf16 MXU operands (Q/K/V/context stored in bf16,
    # ~2^-8 relative) plus the approximate EUP reciprocal in the softmax;
    # accumulation, softmax, residual and LayerNorm math remain f32.
    assert jnp.allclose(out, ref, atol=2e-2, rtol=2e-2), float(
        jnp.max(jnp.abs(out - ref)))

    print("KERNEL_OK")
</pallas_src>

<mosaic_0001>
module attributes {stable_mosaic.version = 11 : i64} {
  func.func @_qkv_kernel(%arg0: i32, %arg1: i32, %arg2: i32, %arg3: memref<8x32xf32, #tpu.memory_space<vmem>>, %arg4: memref<32x32xbf16, #tpu.memory_space<vmem>>, %arg5: memref<32x32xbf16, #tpu.memory_space<vmem>>, %arg6: memref<32x32xbf16, #tpu.memory_space<vmem>>, %arg7: memref<1x32xf32, #tpu.memory_space<vmem>>, %arg8: memref<1x32xf32, #tpu.memory_space<vmem>>, %arg9: memref<1x32xf32, #tpu.memory_space<vmem>>, %arg10: memref<8x32xbf16, #tpu.memory_space<vmem>>, %arg11: memref<8x32xbf16, #tpu.memory_space<vmem>>, %arg12: memref<8x32xbf16, #tpu.memory_space<vmem>>, %arg13: memref<8x32xf32, #tpu.memory_space<vmem>>, %arg14: memref<8x32xf32, #tpu.memory_space<vmem>>, %arg15: memref<8x32xf32, #tpu.memory_space<vmem>>) attributes {dimension_semantics = [#tpu.dimension_semantics<parallel>, #tpu.dimension_semantics<parallel>, #tpu.dimension_semantics<arbitrary>], iteration_bounds = array<i64: 2, 1, 1>, scalar_prefetch = 0 : i64, scratch_operands = 3 : i64, tpu.core_type = #tpu.core_type<tc>, window_params = [{transform_indices = @transform_0, window_bounds = array<i64: 8, 32>}, {transform_indices = @transform_1, window_bounds = array<i64: 32, 32>}, {transform_indices = @transform_2, window_bounds = array<i64: 32, 32>}, {transform_indices = @transform_3, window_bounds = array<i64: 32, 32>}, {transform_indices = @transform_4, window_bounds = array<i64: 1, 32>}, {transform_indices = @transform_5, window_bounds = array<i64: 1, 32>}, {transform_indices = @transform_6, window_bounds = array<i64: 1, 32>}, {transform_indices = @transform_7, window_bounds = array<i64: 8, 32>}, {transform_indices = @transform_8, window_bounds = array<i64: 8, 32>}, {transform_indices = @transform_9, window_bounds = array<i64: 8, 32>}]} {
    %c0_i32 = arith.constant 0 : i32
    %0 = arith.cmpi eq, %arg2, %c0_i32 : i32
    %1 = arith.extui %0 : i1 to i32
    %c0_i32_0 = arith.constant 0 : i32
    %2 = arith.cmpi ne, %1, %c0_i32_0 : i32
    scf.if %2 {
      %cst_24 = arith.constant 0.000000e+00 : f32
      %23 = vector.broadcast %cst_24 : f32 to vector<8x32xf32>
      %c0_25 = arith.constant 0 : index
      %c0_26 = arith.constant 0 : index
      %24 = vector.load %arg13[%c0_25, %c0_26] : memref<8x32xf32, #tpu.memory_space<vmem>>, vector<8x32xf32>
      tpu.vector_store %arg13[%c0_25, %c0_26], %23 {strides = array<i32>} : memref<8x32xf32, #tpu.memory_space<vmem>>, vector<8x32xf32>,
      %cst_27 = arith.constant 0.000000e+00 : f32
      %25 = vector.broadcast %cst_27 : f32 to vector<8x32xf32>
      %c0_28 = arith.constant 0 : index
      %c0_29 = arith.constant 0 : index
      %26 = vector.load %arg14[%c0_28, %c0_29] : memref<8x32xf32, #tpu.memory_space<vmem>>, vector<8x32xf32>
      tpu.vector_store %arg14[%c0_28, %c0_29], %25 {strides = array<i32>} : memref<8x32xf32, #tpu.memory_space<vmem>>, vector<8x32xf32>,
      %cst_30 = arith.constant 0.000000e+00 : f32
      %27 = vector.broadcast %cst_30 : f32 to vector<8x32xf32>
      %c0_31 = arith.constant 0 : index
      %c0_32 = arith.constant 0 : index
      %28 = vector.load %arg15[%c0_31, %c0_32] : memref<8x32xf32, #tpu.memory_space<vmem>>, vector<8x32xf32>
      tpu.vector_store %arg15[%c0_31, %c0_32], %27 {strides = array<i32>} : memref<8x32xf32, #tpu.memory_space<vmem>>, vector<8x32xf32>,
    } else {
    }
    %c0 = arith.constant 0 : index
    %c0_1 = arith.constant 0 : index
    %3 = vector.load %arg3[%c0, %c0_1] : memref<8x32xf32, #tpu.memory_space<vmem>>, vector<8x32xf32>
    %4 = arith.truncf %3 : vector<8x32xf32> to vector<8x32xbf16>
    %c0_2 = arith.constant 0 : index
    %c0_3 = arith.constant 0 : index
    %5 = vector.load %arg13[%c0_2, %c0_3] : memref<8x32xf32, #tpu.memory_space<vmem>>, vector<8x32xf32>
    %c0_4 = arith.constant 0 : index
    %c0_5 = arith.constant 0 : index
    %6 = vector.load %arg4[%c0_4, %c0_5] : memref<32x32xbf16, #tpu.memory_space<vmem>>, vector<32x32xbf16>
    %cst = arith.constant dense<0.000000e+00> : vector<8x32xf32>
    %7 = tpu.matmul %4, %6, %cst {dimension_numbers = #tpu.dot_dimension_numbers<[1], [1], [0], [0], [0, 0, 1, 0], [], []>} : vector<8x32xbf16>, vector<32x32xbf16>, vector<8x32xf32> -> vector<8x32xf32>
    %8 = arith.addf %5, %7 : vector<8x32xf32>
    %c0_6 = arith.constant 0 : index
    %c0_7 = arith.constant 0 : index
    %9 = vector.load %arg13[%c0_6, %c0_7] : memref<8x32xf32, #tpu.memory_space<vmem>>, vector<8x32xf32>
    tpu.vector_store %arg13[%c0_6, %c0_7], %8 {strides = array<i32>} : memref<8x32xf32, #tpu.memory_space<vmem>>, vector<8x32xf32>,
    %c0_8 = arith.constant 0 : index
    %c0_9 = arith.constant 0 : index
    %10 = vector.load %arg14[%c0_8, %c0_9] : memref<8x32xf32, #tpu.memory_space<vmem>>, vector<8x32xf32>
    %c0_10 = arith.constant 0 : index
    %c0_11 = arith.constant 0 : index
    %11 = vector.load %arg5[%c0_10, %c0_11] : memref<32x32xbf16, #tpu.memory_space<vmem>>, vector<32x32xbf16>
    %cst_12 = arith.constant dense<0.000000e+00> : vector<8x32xf32>
    %12 = tpu.matmul %4, %11, %cst_12 {dimension_numbers = #tpu.dot_dimension_numbers<[1], [1], [0], [0], [0, 0, 1, 0], [], []>} : vector<8x32xbf16>, vector<32x32xbf16>, vector<8x32xf32> -> vector<8x32xf32>
    %13 = arith.addf %10, %12 : vector<8x32xf32>
    %c0_13 = arith.constant 0 : index
    %c0_14 = arith.constant 0 : index
    %14 = vector.load %arg14[%c0_13, %c0_14] : memref<8x32xf32, #tpu.memory_space<vmem>>, vector<8x32xf32>
    tpu.vector_store %arg14[%c0_13, %c0_14], %13 {strides = array<i32>} : memref<8x32xf32, #tpu.memory_space<vmem>>, vector<8x32xf32>,
    %c0_15 = arith.constant 0 : index
    %c0_16 = arith.constant 0 : index
    %15 = vector.load %arg15[%c0_15, %c0_16] : memref<8x32xf32, #tpu.memory_space<vmem>>, vector<8x32xf32>
    %c0_17 = arith.constant 0 : index
    %c0_18 = arith.constant 0 : index
    %16 = vector.load %arg6[%c0_17, %c0_18] : memref<32x32xbf16, #tpu.memory_space<vmem>>, vector<32x32xbf16>
    %cst_19 = arith.constant dense<0.000000e+00> : vector<8x32xf32>
    %17 = tpu.matmul %4, %16, %cst_19 {dimension_numbers = #tpu.dot_dimension_numbers<[1], [1], [0], [0], [0, 0, 1, 0], [], []>} : vector<8x32xbf16>, vector<32x32xbf16>, vector<8x32xf32> -> vector<8x32xf32>
    %18 = arith.addf %15, %17 : vector<8x32xf32>
    %c0_20 = arith.constant 0 : index
    %c0_21 = arith.constant 0 : index
    %19 = vector.load %arg15[%c0_20, %c0_21] : memref<8x32xf32, #tpu.memory_space<vmem>>, vector<8x32xf32>
    tpu.vector_store %arg15[%c0_20, %c0_21], %18 {strides = array<i32>} : memref<8x32xf32, #tpu.memory_space<vmem>>, vector<8x32xf32>,
    %c0_i32_22 = arith.constant 0 : i32
    %20 = arith.cmpi eq, %arg2, %c0_i32_22 : i32
    %21 = arith.extui %20 : i1 to i32
    %c0_i32_23 = arith.constant 0 : i32
    %22 = arith.cmpi ne, %21, %c0_i32_23 : i32
    scf.if %22 {
      %c0_24 = arith.constant 0 : index
      %c0_25 = arith.constant 0 : index
      %23 = vector.load %arg13[%c0_24, %c0_25] : memref<8x32xf32, #tpu.memory_space<vmem>>, vector<8x32xf32>
      %c0_26 = arith.constant 0 : index
      %c0_27 = arith.constant 0 : index
      %24 = vector.load %arg7[%c0_26, %c0_27] : memref<1x32xf32, #tpu.memory_space<vmem>>, vector<1x32xf32>
      %25 = vector.broadcast %24 : vector<1x32xf32> to vector<8x32xf32>
      %26 = arith.addf %23, %25 : vector<8x32xf32>
      %27 = arith.truncf %26 : vector<8x32xf32> to vector<8x32xbf16>
      %c0_28 = arith.constant 0 : index
      %c0_29 = arith.constant 0 : index
      %28 = vector.load %arg10[%c0_28, %c0_29] : memref<8x32xbf16, #tpu.memory_space<vmem>>, vector<8x32xbf16>
      tpu.vector_store %arg10[%c0_28, %c0_29], %27 {strides = array<i32>} : memref<8x32xbf16, #tpu.memory_space<vmem>>, vector<8x32xbf16>,
      %c0_30 = arith.constant 0 : index
      %c0_31 = arith.constant 0 : index
      %29 = vector.load %arg14[%c0_30, %c0_31] : memref<8x32xf32, #tpu.memory_space<vmem>>, vector<8x32xf32>
      %c0_32 = arith.constant 0 : index
      %c0_33 = arith.constant 0 : index
      %30 = vector.load %arg8[%c0_32, %c0_33] : memref<1x32xf32, #tpu.memory_space<vmem>>, vector<1x32xf32>
      %31 = vector.broadcast %30 : vector<1x32xf32> to vector<8x32xf32>
      %32 = arith.addf %29, %31 : vector<8x32xf32>
      %33 = arith.truncf %32 : vector<8x32xf32> to vector<8x32xbf16>
      %c0_34 = arith.constant 0 : index
      %c0_35 = arith.constant 0 : index
      %34 = vector.load %arg11[%c0_34, %c0_35] : memref<8x32xbf16, #tpu.memory_space<vmem>>, vector<8x32xbf16>
      tpu.vector_store %arg11[%c0_34, %c0_35], %33 {strides = array<i32>} : memref<8x32xbf16, #tpu.memory_space<vmem>>, vector<8x32xbf16>,
      %c0_36 = arith.constant 0 : index
      %c0_37 = arith.constant 0 : index
      %35 = vector.load %arg15[%c0_36, %c0_37] : memref<8x32xf32, #tpu.memory_space<vmem>>, vector<8x32xf32>
      %c0_38 = arith.constant 0 : index
      %c0_39 = arith.constant 0 : index
      %36 = vector.load %arg9[%c0_38, %c0_39] : memref<1x32xf32, #tpu.memory_space<vmem>>, vector<1x32xf32>
      %37 = vector.broadcast %36 : vector<1x32xf32> to vector<8x32xf32>
      %38 = arith.addf %35, %37 : vector<8x32xf32>
      %39 = arith.truncf %38 : vector<8x32xf32> to vector<8x32xbf16>
      %c0_40 = arith.constant 0 : index
      %c0_41 = arith.constant 0 : index
      %40 = vector.load %arg12[%c0_40, %c0_41] : memref<8x32xbf16, #tpu.memory_space<vmem>>, vector<8x32xbf16>
      tpu.vector_store %arg12[%c0_40, %c0_41], %39 {strides = array<i32>} : memref<8x32xbf16, #tpu.memory_space<vmem>>, vector<8x32xbf16>,
    } else {
    }
    return
  }
  func.func @transform_0(%arg0: i32, %arg1: i32, %arg2: i32) -> (i32, i32) {
    %c0_i32 = arith.constant 0 : i32
    return %arg0, %arg2 : i32, i32
  }
  func.func @transform_1(%arg0: i32, %arg1: i32, %arg2: i32) -> (i32, i32) {
    %c0_i32 = arith.constant 0 : i32
    return %arg1, %arg2 : i32, i32
  }
  func.func @transform_2(%arg0: i32, %arg1: i32, %arg2: i32) -> (i32, i32) {
    %c0_i32 = arith.constant 0 : i32
    return %arg1, %arg2 : i32, i32
  }
  func.func @transform_3(%arg0: i32, %arg1: i32, %arg2: i32) -> (i32, i32) {
    %c0_i32 = arith.constant 0 : i32
    return %arg1, %arg2 : i32, i32
  }
  func.func @transform_4(%arg0: i32, %arg1: i32, %arg2: i32) -> (i32, i32) {
    %c0_i32 = arith.constant 0 : i32
    %c0_i32_0 = arith.constant 0 : i32
    return %c0_i32, %arg1 : i32, i32
  }
  func.func @transform_5(%arg0: i32, %arg1: i32, %arg2: i32) -> (i32, i32) {
    %c0_i32 = arith.constant 0 : i32
    %c0_i32_0 = arith.constant 0 : i32
    return %c0_i32, %arg1 : i32, i32
  }
  func.func @transform_6(%arg0: i32, %arg1: i32, %arg2: i32) -> (i32, i32) {
    %c0_i32 = arith.constant 0 : i32
    %c0_i32_0 = arith.constant 0 : i32
    return %c0_i32, %arg1 : i32, i32
  }
  func.func @transform_7(%arg0: i32, %arg1: i32, %arg2: i32) -> (i32, i32) {
    %c0_i32 = arith.constant 0 : i32
    return %arg0, %arg1 : i32, i32
  }
  func.func @transform_8(%arg0: i32, %arg1: i32, %arg2: i32) -> (i32, i32) {
    %c0_i32 = arith.constant 0 : i32
    return %arg0, %arg1 : i32, i32
  }
  func.func @transform_9(%arg0: i32, %arg1: i32, %arg2: i32) -> (i32, i32) {
    %c0_i32 = arith.constant 0 : i32
    return %arg0, %arg1 : i32, i32
  }
}

</mosaic_0001>

<bundles_post_ra>
// kernel: tpu_custom_call.1
= control target key start
LH: loop header
LB: loop body
LE: loop exit
PB: predicated region body
PF: predicated region fallthrough
CT: control target
= control target key end

     0   :  { %s1824_s0 = inlined_call_operand.hbm [shape: f32[16,32], index: 0, kind: input, shape index: {}]   ;;  %s1825_s1 = inlined_call_operand.hbm [shape: bf16[32,32], index: 1, kind: input, shape index: {}]   ;;  %s1826_s2 = inlined_call_operand.hbm [shape: bf16[32,32], index: 2, kind: input, shape index: {}]   ;;  %s1827_s3 = inlined_call_operand.hbm [shape: bf16[32,32], index: 3, kind: input, shape index: {}]   ;;  %s1828_s4 = inlined_call_operand.vmem [shape: f32[1,32], index: 4, kind: input, shape index: {}]   ;;  %s1829_s5 = inlined_call_operand.vmem [shape: f32[1,32], index: 5, kind: input, shape index: {}]   ;;  %s1830_s6 = inlined_call_operand.vmem [shape: f32[1,32], index: 6, kind: input, shape index: {}]   ;;  %s1831_s7 = inlined_call_operand.hbm [shape: bf16[16,32], index: 7, kind: output, shape index: {0}]   ;;  %s1832_s8 = inlined_call_operand.hbm [shape: bf16[16,32], index: 8, kind: output, shape index: {1}]   ;;  %s1833_s9 = inlined_call_operand.hbm [shape: bf16[16,32], index: 9, kind: output, shape index: {2}]  }
   0x1   :  { %1840 = sst [smem:[#allocation24_spill]] %s1825_s1 }
   0x2   :  { %1841 = sst [smem:[#allocation25_spill]] %s1826_s2 }
   0x3   :  { %1842 = sst [smem:[#allocation26_spill]] %s1827_s3 }
   0x4   :  { %15 = vsyncpa [#allocation6], 0 }
   0x5   :  { %17 = vsyncpa [#allocation6 + $0x1], 0 }
   0x6   :  { %18 = vsyncpa [#allocation9], 0 }
   0x7   :  { %19 = vsyncpa [#allocation12], 0 }
   0x8   :  { %20 = vsyncpa [#allocation7], 0 }
   0x9   :  { %22 = vsyncpa [#allocation7 + $0x1], 0 }
   0xa   :  { %23 = vsyncpa [#allocation15], 0 }
   0xb   :  { %25 = vsyncpa [#allocation15 + $0x1], 0  ;;  %s1532_s30 = smov 0   ;;  %s1534_s10 = smov 0  }
   0xc   :  { %s1536_s11 = smov 0   ;;  %s1538_s12 = smov 0  }
   0xd   :  { %s1540_s13 = smov 0   ;;  %s1542_s14 = smov 0  }
   0xe LB: > { %s1563_s15 = sadd.s32 4294967295, %s1469_s14   ;;  %s1835_s16 = sadd.s32 4294967294, %s1469_s14   ;;  %s1469_s14 = sphi %s1542_s14, %s31_s14   ;;  %s1465_s13 = sphi %s1540_s13, %s1871_s13   ;;  %s1461_s12 = sphi %s1538_s12, %s1870_s12   ;;  %s1457_s11 = sphi %s1536_s11, %s1869_s11   ;;  %s1453_s10 = sphi %s1534_s10, %s1868_s10   ;;  %s1449_s30 = sphi %s1532_s30, %s1867_s30  }
   0xf   : > { %p72_p0 = scmp.ne.s32.totalorder %s1453_s10, %s1449_s30  ;;  %p1834_p1 = scmp.eq.s32.totalorder %s1563_s15, 0 }
  0x10   : > { %p266_p3 = scmp.eq.s32.totalorder %s1835_s16, 1  ;;  %p1035_p5 = scmp.ge.s32.totalorder %s1469_s14, 1 }
  0x11   : > { %p1574_p4 = por %p1834_p1, %p72_p0  ;;  %p329_p7 = scmp.lt.s32.totalorder %s1469_s14, 3 }
  0x12   : > { %p1579_p6 = por %p266_p3, %p72_p0  ;;  %s1471_s20 = smov [#allocation8]  }
  0x13   : > { %s1843_s17 = scalar_select %p1574_p4, 1, 0 }
  0x14   : > { %s1844_s18 = scalar_select %p1579_p6, 1, 0 }
  0x15   : > { %p1584_p8 = pnand %p1035_p5, %p329_p7  ;;  %s345_s21 = sshll.u32 %s1471_s20, 4  ;;  %s346_s21 = int_to_ptr.vmem [resolvable:$true] %s345_s21 }
  0x16   : > { %1845 = sst [smem:[#allocation22_spill]] %s1844_s18  ;;  %s1472_s23 = smov [#allocation10]  }
  0x17   : > { %p1126_p9 = pneg %p1584_p8  ;;  %s362_s24 = sshll.u32 %s1472_s23, 4  ;;  %s363_s24 = int_to_ptr.vmem [resolvable:$true] %s362_s24 }
  0x18   : > { %s1473_s25 = smov [#allocation11]   ;;  %s1230_s27 = scalar_lea.vmem %s346_s21, 256 }
  0x19   : > { %p1593_p11 = pnand %p1126_p9, %p1834_p1  ;;  %s379_s26 = sshll.u32 %s1473_s25, 4  ;;  %s380_s26 = int_to_ptr.vmem [resolvable:$true] %s379_s26 }
  0x1a   : > { %p1231_p13 = scmp.ne.s32.totalorder %s346_s21, %s1230_s27  ;;  %p1238_p5 = scmp.lt.s32.totalorder %s346_s21, %s346_s21 }
  0x1b   : > { %p1221_p12 = pneg %p1593_p11  ;;  %p1239_p7 = scmp.lt.s32.totalorder %s1230_s27, %s1230_s27 }
  0x1d   : > { %p1233_p0 = pnand %p1231_p13, %p1221_p12  ;;  %p1240_p9 = por %p1239_p7, %p1238_p5 }
  0x1f   : > { %p1234_p3 = pneg %p1233_p0 }
  0x21   : > { %p1241_p10 = pnand %p1240_p9, %p1234_p3 }
  0x23   : > { %1244 = shalt.err (!%p1241_p10)
}
  0x24   : > { %s1474_s28 = smov 64   ;;  %s1475_s29 = smov 4  }
  0x25   : > { %s1848_s1 = sld [smem:[#allocation24_spill]]  ;;  %s1256_s25 = scalar_lea.vmem %s363_s24, 256 }
  0x26   : > { %p1257_p1 = scmp.ne.s32.totalorder %s363_s24, %s1256_s25  ;;  %p1264_p2 = scmp.lt.s32.totalorder %s363_s24, %s363_s24 }
  0x27   : > { %p1265_p6 = scmp.lt.s32.totalorder %s1256_s25, %s1256_s25 }
  0x28   : > { %p1259_p13 = pnand %p1257_p1, %p1221_p12 }
  0x29   : > { %p1266_p5 = por %p1265_p6, %p1264_p2 }
  0x2a   : > { %p1260_p0 = pneg %p1259_p13 }
  0x2b   : > { %1129 = dma.hbm_to_vmem [thread:$0]  (!%p1593_p11), %s1848_s1, 256, %s346_s21, [#allocation9], %s1474_s28, %s1474_s28, %s1475_s29  }
  0x2c   : > { %p1267_p3 = pnand %p1266_p5, %p1260_p0 }
  0x2e   : > { %1270 = shalt.err (!%p1267_p3)
}
  0x2f   : > { %s1849_s2 = sld [smem:[#allocation25_spill]]  ;;  %s1282_s21 = scalar_lea.vmem %s380_s26, 256 }
  0x30   : > { %p1283_p10 = scmp.ne.s32.totalorder %s380_s26, %s1282_s21  ;;  %p1290_p9 = scmp.lt.s32.totalorder %s380_s26, %s380_s26 }
  0x31   : > { %p1291_p13 = scmp.lt.s32.totalorder %s1282_s21, %s1282_s21 }
  0x32   : > { %p1285_p7 = pnand %p1283_p10, %p1221_p12 }
  0x33   : > { %p1292_p4 = por %p1291_p13, %p1290_p9 }
  0x34   : > { %p1286_p1 = pneg %p1285_p7 }
  0x35   : > { %1132 = dma.hbm_to_vmem [thread:$0]  (!%p1593_p11), %s1849_s2, 256, %s363_s24, [#allocation9], %s1474_s28, %s1474_s28, %s1475_s29  }
  0x36   : > { %p1293_p2 = pnand %p1292_p4, %p1286_p1 }
  0x38   : > { %1296 = shalt.err (!%p1293_p2)
}
  0x39   : > { %s1850_s3 = sld [smem:[#allocation26_spill]]  ;;  %s59_s16 = sadd.s32 1, %s1457_s11 }
  0x3a   : > { %s50_s24 = sadd.s32 1, %s1465_s13  ;;  %p66_p4 = scmp.ne.s32.totalorder %s1457_s11, %s1453_s10 }
  0x3b   : > { %p52_p6 = scmp.ge.s32.totalorder %s50_s24, 2  ;;  %p67_p12 = scmp.eq.s32.totalorder %s1469_s14, 0 }
  0x3c   : > { %p1851_p0 = scmp.eq.s32.totalorder %s1563_s15, 1  ;;  %p1153_p3 = scmp.lt.s32.totalorder %s1469_s14, 2 }
  0x3d   : > { %s1873_s24 = smov (%p52_p6, %s50_s24), 0  ;;  %p68_p10 = por %p67_p12, %p66_p4 }
  0x3e   : > { %p1630_p5 = por %p1851_p0, %p66_p4  ;;  %1853 = sst [smem:[#allocation23_spill]] %s1873_s24 }
  0x3f   : > { %1135 = dma.hbm_to_vmem [thread:$0]  (!%p1593_p11), %s1850_s3, 256, %s380_s26, [#allocation12], %s1474_s28, %s1474_s28, %s1475_s29  }
  0x40   : > { %s411_s25 = sand.u32 1, %s1457_s11   ;;  %s54_s27 = ssub.s32 %s1465_s13, %s1873_s24 }
  0x41   : > { %p57_p7 = scmp.eq.s32.totalorder %s54_s27, 0  ;;  %s1043_s26 = sshll.u32 %s411_s25, 3 }
  0x42   : > { %s1044_s28 = sshll.u32 %s1465_s13, 7  ;;  %s415_s1 = scalar_lea.vmem [#allocation5], %s1043_s26 }
  0x43   : > { %s1642_s29 = scalar_select %p57_p7, %s1457_s11, %s59_s16  }
  0x44   : > { %s421_s23 = scalar_lea.hbm %s1824_s0, %s1044_s28  ;;  %s423_s2 = sshll.u32 %s415_s1, 4  ;;  %s424_s2 = int_to_ptr.vmem [resolvable:$true] %s423_s2 }
  0x45   : > { %p1649_p11 = pnand %p1153_p3, %p68_p10  ;;  %s412_s18 = scalar_lea.sflag [#allocation6], %s411_s25 }
  0x46   : > { %s1310_s27 = scalar_lea.vmem %s424_s2, 128  ;;  %s1476_s16 = smov [#allocation5]  }
  0x47   : > { %p1299_p1 = pneg %p1649_p11  ;;  %p1311_p9 = scmp.ne.s32.totalorder %s424_s2, %s1310_s27 }
  0x48   : > { %s1315_s24 = sshll.u32 %s1476_s16, 4  ;;  %s1316_s24 = int_to_ptr.vmem [resolvable:$false] %s1315_s24 }
  0x49   : > { %p1313_p13 = pnand %p1311_p9, %p1299_p1  ;;  %s1317_s28 = scalar_lea.vmem %s1316_s24, 256 }
  0x4a   : > { %p1318_p4 = scmp.lt.s32.totalorder %s424_s2, %s1316_s24  ;;  %p1319_p6 = scmp.lt.s32.totalorder %s1317_s28, %s1310_s27 }
  0x4b   : > { %p1314_p2 = pneg %p1313_p13 }
  0x4c   : > { %p1320_p12 = por %p1319_p6, %p1318_p4 }
  0x4e   : > { %p1321_p0 = pnand %p1320_p12, %p1314_p2 }
  0x50   : > { %1324 = shalt.err (!%p1321_p0)
}
  0x51   : > { %1139 = dma.hbm_to_vmem [thread:$0]  (!%p1649_p11), %s421_s23, 128, %s424_s2, %s412_s18  }
  0x52   : > { %432 = sbr.rel (%p1584_p8) target bundleno = 381 (0x17d), region = 48  ;;  %s1660_s1 = sand.u32 (!%p1584_p8), 1, %s1453_s10  }
  0x53   : > { %s1046_s25 = sshll.u32 (!%p1584_p8), %s1660_s1, 3  ;;  %s435_s26 = scalar_lea.sflag (!%p1584_p8), [#allocation6], %s1660_s1 }
  0x54   : > { %s438_s21 = scalar_lea.vmem (!%p1584_p8), [#allocation5], %s1046_s25  ;;  %p1855_p3 = scmp.ne.s32.totalorder (!%p1584_p8), %s1843_s17, 0 }
  0x57   : > { %1428 = dma.done.wait (%p1855_p3), %s435_s26, 128  }
  0x58   : > { %1430 = vsyncadd (%p1855_p3), %s435_s26, 4294967168  ;;  %p1856_p10 = scmp.eq.s32.totalorder %s1563_s15, 0 }
  0x5a   : > { %1432 = dma.done.wait (%p1856_p10), [#allocation9], 512   ;;  %p1857_p7 = pmov %p1856_p10 }
  0x5c   : > { %1434 = vsyncadd (%p1857_p7), [#allocation9], 4294966784  ;;  %p1858_p8 = pmov %p1857_p7 }
  0x5d   : > { %p1859_p11 = pmov %p1857_p7 }
  0x5e   : > { %1436 = dma.done.wait (%p1858_p8), [#allocation12], 256  }
  0x5f   : > { %1438 = vsyncadd (%p1859_p11), [#allocation12], 4294967040  ;;  %vm521_vm0 = vcmask 261120   ;;  %v1477_v0 = vmov 0.0   ;;  %vm1478_vm1 = vmmov 0   ;;  %v1213_v1 = vld [vmem:[#allocation8 + $0x8] sm:$0xff]  }
  0x60   : > { %1082 = vmatprep.subr.bf16.mxu0 %v1477_v0  ;;  %522 = vst.msk [vmem:[#allocation2] sm:$0xff] %vm521_vm0, %v1477_v0  ;;  %523 = vst.msk [vmem:[#allocation3] sm:$0xff] %vm521_vm0, %v1477_v0  ;;  %1090 = vmatprep.subr.bf16.mxu1 %v1477_v0  ;;  %v550_v2 = vsel %vm521_vm0, %v1213_v1, 0  ;;  %v1215_v3 = vld [vmem:[#allocation10 + $0x8] sm:$0xff]   ;;  %v1214_v4 = vld [vmem:[#allocation8] sm:$0xff]   ;;  %s1694_s2 = sshll.u32 %s1660_s1, 2 }
  0x61   : > { %524 = vst.msk [vmem:[#allocation4] sm:$0xff] %vm521_vm0, %v1477_v0  ;;  %1086 = vmatprep.mubr.msk.bf16.mxu0 %vm1478_vm1, %v1477_v0  ;;  %1094 = vmatprep.mubr.msk.bf16.mxu1 %vm1478_vm1, %v1477_v0  ;;  %v613_v5 = vsel %vm521_vm0, %v1215_v3, 0  ;;  %v1217_v6 = vld [vmem:[#allocation10] sm:$0xff]   ;;  %v547_v7 = vsel %vm521_vm0, %v1214_v4, 0  ;;  %v1216_v10 = vld [vmem:[#allocation11 + $0x8] sm:$0xff]   ;;  %v1218_v13 = vld [vmem:[#allocation11] sm:$0xff]  }
  0x62   : > { %1083 = vmatpush3.bf16.xpose.msra.mxu0 %v550_v2  ;;  %1091 = vmatpush3.bf16.xpose.msra.mxu1 %v613_v5  ;;  %v610_v8 = vsel %vm521_vm0, %v1217_v6, 0  ;;  %v525_v9 = vld [vmem:[%s438_s21] sm:$0xff]  ;;  %v676_v12 = vsel %vm521_vm0, %v1216_v10, 0  ;;  %v673_v14 = vsel %vm521_vm0, %v1218_v13, 0  ;;  %s1703_s24 = sshll.u32 %s1461_s12, 6  ;;  %s489_s20 = scalar_lea.vmem [#allocation13], %s1694_s2 }
  0x63   : > { %1084 = vmatprep.subr.bf16.mxu0 %v1477_v0  ;;  %1092 = vmatprep.subr.bf16.mxu1 %v1477_v0  ;;  %v526_v11 = vpack.c.bf16 %v525_v9, %v525_v9  ;;  %v1062_v27 = vld [vmem:[%s1828_s4] ss:$0 sm:$0xff]  ;;  %s782_s23 = sshll.u32 %s489_s20, 4  ;;  %vm733_vm2 = vcmask 257024   ;;  %s1839_s16 = scalar_lea.vmem [#allocation14], %s1694_s2  ;;  %s1716_s23 = int_to_ptr.vmem [resolvable:$true] %s782_s23 }
  0x64   : > { %v1063_v28 = vld [vmem:[%s1829_s5] ss:$0 sm:$0xff]  ;;  %s796_s28 = sshll.u32 %s1839_s16, 4  ;;  %s1714_s12 = scalar_lea.hbm %s1831_s7, %s1703_s24  ;;  %s1724_s28 = int_to_ptr.vmem [resolvable:$true] %s796_s28 }
  0x65   : > { %s1722_s17 = scalar_lea.hbm %s1832_s8, %s1703_s24  ;;  %s758_s18 = scalar_lea.sflag [#allocation7], %s1660_s1 }
  0x66   : > { %s1325_s19 = scalar_lea.vmem %s1716_s23, 64  ;;  %s1479_s25 = smov [#allocation13]  }
  0x67   : > { %v527_v15 = vld [vmem:[#allocation2] sm:$0xff]  ;;  %v594_v17 = vld [vmem:[#allocation3] sm:$0xff]  ;;  %p1326_p1 = scmp.ne.s32.totalorder %s1716_s23, %s1325_s19  ;;  %s1329_s26 = sshll.u32 %s1479_s25, 4  ;;  %s1330_s26 = int_to_ptr.vmem [resolvable:$false] %s1329_s26 }
  0x68   : > { %v657_v34 = vld [vmem:[#allocation4] sm:$0xff]  ;;  %s1331_s27 = scalar_lea.vmem %s1330_s26, 128  ;;  %p1332_p2 = scmp.lt.s32.totalorder %s1716_s23, %s1330_s26 }
  0x69   : > { %p1327_p9 = pnand %p1326_p1, %p1630_p5  ;;  %p1333_p4 = scmp.lt.s32.totalorder %s1331_s27, %s1325_s19 }
  0x6a   : > { %1085 = vmatpush3.bf16.xpose.msra.mxu0 %v547_v7  ;;  %1093 = vmatpush3.bf16.xpose.msra.mxu1 %v610_v8 }
  0x6b   : > { %1098 = vmatprep.subr.bf16.mxu0 %v1477_v0  ;;  %p1328_p13 = pneg %p1327_p9  ;;  %p1334_p6 = por %p1333_p4, %p1332_p2 }
  0x6d   : > { %p1335_p12 = pnand %p1334_p6, %p1328_p13 }
  0x71   : > { %1087 = vmatmul.mubr.msk.bf16.vlgmr.msra.gmra.mxu0 %vm521_vm0, %v526_v11  ;;  %1095 = vmatmul.mubr.msk.bf16.vlgmr.msra.gmra.mxu1 %vm521_vm0, %v526_v11 }
  0x72   : > { %1099 = vmatpush3.bf16.xpose.msra.mxu0 %v676_v12  ;;  %1102 = vmatprep.mubr.msk.bf16.mxu0 %vm1478_vm1, %v1477_v0 }
  0x73   : > { %1100 = vmatprep.subr.bf16.mxu0 %v1477_v0 }
  0x7a   : > { %1101 = vmatpush3.bf16.xpose.msra.mxu0 %v673_v14 }
  0x81   : > { %1103 = vmatmul.mubr.msk.bf16.vlgmr.msra.gmra.mxu0 %vm521_vm0, %v526_v11 }
 0x131   : > { %v586_v16 = vpop.f32.mrf.mxu0  ;;  %v649_v20 = vpop.f32.mrf.mxu1 }
 0x132   : > { %v592_v18 = vadd.f32 %v586_v16, %v527_v15  ;;  %v655_v21 = vadd.f32 %v649_v20, %v594_v17 }
 0x133   : > { %v1088_v19 = vpop.f32.mrf.mxu0  ;;  %v1096_v23 = vpop.f32.mrf.mxu1 }
 0x134   : > { %593 = vst.msk [vmem:[#allocation2] sm:$0xff] %vm521_vm0, %v592_v18  ;;  %656 = vst.msk [vmem:[#allocation3] sm:$0xff] %vm521_vm0, %v655_v21 }
 0x135   : > { %v589_v22 = vpop.f32.mrf.mxu0  ;;  %v652_v25 = vpop.f32.mrf.mxu1 }
 0x137   : > { %v1089_v24 = vpop.f32.mrf.mxu0  ;;  %v1097_v26 = vpop.f32.mrf.mxu1 }
 0x13b   : > { %v723_v29 = vld [vmem:[#allocation2] sm:$0xff]  ;;  %v735_v31 = vld [vmem:[#allocation3] sm:$0xff] }
 0x13c   : > { %v731_v30 = vadd.f32 %v1062_v27, %v723_v29  ;;  %v743_v32 = vadd.f32 %v1063_v28, %v735_v31 }
 0x13e   : > { %v732_v33 = vpack.c.bf16 %v731_v30, %v731_v30  ;;  %v744_v35 = vpack.c.bf16 %v743_v32, %v743_v32 }
 0x140   : > { %734 = vst.msk [vmem:[%s489_s20] sm:$0xf] %vm733_vm2, %v732_v33 }
 0x141   : > { %v712_v36 = vpop.f32.mrf.mxu0 }
 0x142   : > { %1338 = shalt.err (!%p1335_p12)
}
 0x143   : > { %s1339_s20 = scalar_lea.hbm %s1714_s12, 64  ;;  %s1343_s3 = scalar_lea.hbm %s1831_s7, 128 }
 0x144   : > { %p1340_p0 = scmp.ne.s32.totalorder %s1714_s12, %s1339_s20  ;;  %p1344_p7 = scmp.lt.s32.totalorder %s1714_s12, %s1831_s7 }
 0x145   : > { %p1345_p8 = scmp.lt.s32.totalorder %s1343_s3, %s1339_s20 }
 0x146   : > { %p1341_p3 = pnand %p1340_p0, %p1630_p5 }
 0x147   : > { %p1346_p11 = por %p1345_p8, %p1344_p7 }
 0x148   : > { %p1342_p10 = pneg %p1341_p3 }
 0x14a   : > { %p1347_p1 = pnand %p1346_p11, %p1342_p10 }
 0x14c   : > { %1350 = shalt.err (!%p1347_p1)
}
 0x14d   : > { %1120 = dma.vmem_to_hbm [thread:$0]  (%p1630_p5), %s1716_s23, 64, %s1714_s12, %s758_s18   ;;  %v718_v37 = vadd.f32 %v712_v36, %v657_v34  ;;  %v1104_v38 = vpop.f32.mrf.mxu0 }
 0x14e   : > { %s1860_s27 = scalar_lea.vmem [#allocation14], %s1694_s2  ;;  %s1861_s16 = sand.u32 1, %s1563_s15  }
 0x14f   : > { %745 = vst.msk [vmem:[%s1860_s27] sm:$0xf] %vm733_vm2, %v744_v35  ;;  %s1753_s19 = scalar_lea.sflag [#allocation15], %s1861_s16  ;;  %s1351_s26 = scalar_lea.vmem %s1724_s28, 64 }
 0x150   : > { %p1352_p9 = scmp.ne.s32.totalorder %s1724_s28, %s1351_s26  ;;  %s1480_s20 = smov [#allocation14]  }
 0x151   : > { %s1355_s1 = sshll.u32 %s1480_s20, 4  ;;  %s1356_s1 = int_to_ptr.vmem [resolvable:$false] %s1355_s1 }
 0x152   : > { %p1353_p13 = pnand %p1352_p9, %p1630_p5  ;;  %s1357_s21 = scalar_lea.vmem %s1356_s1, 128 }
 0x153   : > { %p1358_p4 = scmp.lt.s32.totalorder %s1724_s28, %s1356_s1  ;;  %p1359_p6 = scmp.lt.s32.totalorder %s1357_s21, %s1351_s26 }
 0x154   : > { %p1354_p2 = pneg %p1353_p13 }
 0x155   : > { %p1360_p12 = por %p1359_p6, %p1358_p4 }
 0x157   : > { %p1361_p0 = pnand %p1360_p12, %p1354_p2 }
 0x159   : > { %1364 = shalt.err (!%p1361_p0)
}
 0x15a   : > { %s1365_s15 = scalar_lea.hbm %s1722_s17, 64  ;;  %s1369_s18 = scalar_lea.hbm %s1832_s8, 128 }
 0x15b   : > { %p1366_p3 = scmp.ne.s32.totalorder %s1722_s17, %s1365_s15  ;;  %p1370_p8 = scmp.lt.s32.totalorder %s1722_s17, %s1832_s8 }
 0x15c   : > { %p1371_p11 = scmp.lt.s32.totalorder %s1369_s18, %s1365_s15 }
 0x15d   : > { %p1367_p10 = pnand %p1366_p3, %p1630_p5 }
 0x15e   : > { %p1372_p1 = por %p1371_p11, %p1370_p8 }
 0x15f   : > { %p1368_p7 = pneg %p1367_p10 }
 0x161   : > { %p1373_p9 = pnand %p1372_p1, %p1368_p7 }
 0x163   : > { %1376 = shalt.err (!%p1373_p9)
}
 0x164   : > { %1121 = dma.vmem_to_hbm [thread:$0]  (%p1630_p5), %s1724_s28, 64, %s1722_s17, %s1753_s19   ;;  %719 = vst.msk [vmem:[#allocation4] sm:$0xff] %vm521_vm0, %v718_v37  ;;  %v715_v39 = vpop.f32.mrf.mxu0  ;;  %v1064_v41 = vld [vmem:[%s1830_s6] ss:$0 sm:$0xff] }
 0x165   : > { %s503_s26 = scalar_lea.vmem [#allocation16], %s1694_s2  ;;  %s808_s15 = scalar_lea.hbm %s1833_s9, %s1703_s24 }
 0x166   : > { %v1105_v40 = vpop.f32.mrf.mxu0  ;;  %s810_s20 = sshll.u32 %s503_s26, 4  ;;  %s1481_s17 = smov [#allocation16]   ;;  %s811_s20 = int_to_ptr.vmem [resolvable:$true] %s810_s20 }
 0x167   : > { %s1377_s28 = scalar_lea.vmem %s811_s20, 64  ;;  %s1381_s23 = sshll.u32 %s1481_s17, 4  ;;  %s1382_s23 = int_to_ptr.vmem [resolvable:$false] %s1381_s23 }
 0x168   : > { %p1378_p13 = scmp.ne.s32.totalorder %s811_s20, %s1377_s28  ;;  %s1383_s12 = scalar_lea.vmem %s1382_s23, 128 }
 0x169   : > { %p1384_p6 = scmp.lt.s32.totalorder %s811_s20, %s1382_s23  ;;  %p1385_p12 = scmp.lt.s32.totalorder %s1383_s12, %s1377_s28 }
 0x16a   : > { %p1379_p2 = pnand %p1378_p13, %p1630_p5 }
 0x16b   : > { %v746_v42 = vld [vmem:[#allocation4] sm:$0xff]  ;;  %p1386_p0 = por %p1385_p12, %p1384_p6 }
 0x16c   : > { %v754_v43 = vadd.f32 %v1064_v41, %v746_v42  ;;  %p1380_p4 = pneg %p1379_p2 }
 0x16e   : > { %v755_v44 = vpack.c.bf16 %v754_v43, %v754_v43  ;;  %p1387_p3 = pnand %p1386_p0, %p1380_p4 }
 0x170   : > { %756 = vst.msk [vmem:[%s503_s26] sm:$0xf] %vm733_vm2, %v755_v44 }
 0x171   : > { %1390 = shalt.err (!%p1387_p3)
}
 0x172   : > { %s1391_s2 = scalar_lea.hbm %s808_s15, 64  ;;  %s1395_s3 = scalar_lea.hbm %s1833_s9, 128 }
 0x173   : > { %p1392_p10 = scmp.ne.s32.totalorder %s808_s15, %s1391_s2  ;;  %p1396_p11 = scmp.lt.s32.totalorder %s808_s15, %s1833_s9 }
 0x174   : > { %p1397_p1 = scmp.lt.s32.totalorder %s1395_s3, %s1391_s2 }
 0x175   : > { %p1393_p7 = pnand %p1392_p10, %p1630_p5 }
 0x176   : > { %p1398_p9 = por %p1397_p1, %p1396_p11 }
 0x177   : > { %p1394_p8 = pneg %p1393_p7 }
 0x179   : > { %p1399_p13 = pnand %p1398_p9, %p1394_p8 }
 0x17b   : > { %1402 = shalt.err (!%p1399_p13)
}
 0x17c   : > { %1122 = dma.vmem_to_hbm [thread:$0]  (%p1630_p5), %s811_s20, 64, %s808_s15, %s1753_s19  }
 0x17d PF: > { %s1862_s16 = sld [smem:[#allocation22_spill]]  ;;  %s822_s26 = sand.u32 1, %s1449_s30  }
 0x17e   : > { %p1864_p4 = scmp.ge.s32.totalorder %s1469_s14, 2  ;;  %s823_s1 = scalar_lea.sflag [#allocation7], %s822_s26 }
 0x183   : > { %p1863_p2 = scmp.ne.s32.totalorder %s1862_s16, 0 }
 0x185   : > { %p1141_p6 = pnand %p1864_p4, %p1863_p2 }
 0x187   : > { %p1142_p12 = pneg %p1141_p6 }
 0x189   : > { %1440 = dma.done.wait (%p1142_p12), %s823_s1, 64  }
 0x18a   : > { %1442 = vsyncadd (%p1142_p12), %s823_s1, 4294967232  ;;  %s1865_s21 = sadd.s32 4294967294, %s1469_s14  }
 0x18b   : > { %s831_s28 = sand.u32 1, %s1865_s21  }
 0x18c   : > { %s832_s17 = scalar_lea.sflag [#allocation15], %s831_s28 }
 0x18d   : > { %1444 = dma.done.wait (%p1142_p12), %s832_s17, 128  }
 0x18e   : > { %1446 = vsyncadd (%p1142_p12), %s832_s17, 4294967168  ;;  %s31_s14 = sadd.s32 1, %s1469_s14   ;;  %s1866_s22 = sld [smem:[#allocation23_spill]] }
 0x18f   : > { %p28_p5 = scmp.ge.s32.totalorder %s31_s14, 4   ;;  %s1867_s30 = smov %s1453_s10 }
 0x190   : > { %s1868_s10 = smov %s1457_s11  ;;  %s1869_s11 = smov %s1642_s29 }
 0x191   : > { %s1870_s12 = smov %s1465_s13  ;;  %30 = sbr.rel (!%p28_p5) target bundleno = 14 (0xe), region = 157 }
 0x194   : > { %s1871_s13 = smov %s1866_s22 }
 0x196   :  { %846 = vsyncpa [#allocation6], 1 }
 0x197   :  { %848 = vsyncpa [#allocation6 + $0x1], 1 }
 0x198   :  { %849 = vsyncpa [#allocation9], 1 }
 0x199   :  { %850 = vsyncpa [#allocation12], 1 }
 0x19a   :  { %851 = vsyncpa [#allocation7], 1 }
 0x19b   :  { %853 = vsyncpa [#allocation7 + $0x1], 1 }
 0x19c   :  { %854 = vsyncpa [#allocation15], 1 }
 0x19d   :  { %856 = vsyncpa [#allocation15 + $0x1], 1 }

</bundles_post_ra>
